<compile_context>
chip_gen: v6e
topology: v6e:2x2x1
jax: 0.10.0
libtpu: 0.0.40
codegen_flags: <defaults>
</compile_context>

<pallas_src>
import jax
import jax.numpy as jnp
from jax.experimental import pallas as pl
from jax.experimental.pallas import tpu as pltpu

LANE = 128        # TPU lane width: hidden dim padded 64 -> 128 (lane-dense vregs)
STATE_PAD = 8     # state dim padded 4 -> 8 (clean (8,128) w1 tile, aligned x)
ACTION_PAD = 8    # action dim padded 2 -> 8 (small output writeback, not 128)


def _round_up(n, m):
    return ((n + m - 1) // m) * m


def _num_tensorcores():
    """Best-effort TensorCore count of device 0 (v7x megacore -> 2, else 1)."""
    try:
        dev = jax.devices()[0]
        for attr in ("num_cores", "core_count"):
            n = getattr(dev, attr, None)
            if isinstance(n, int) and n > 0:
                return n
    except Exception:
        pass
    return 1


def qnetwork_kernel(x_ref, w1_ref, b1_ref, w2_ref, b2_ref, w3_ref, b3_ref, o_ref):
    """Fused MLP: (TB,8)bf16 @ (8,128)bf16 -> f32 +b,relu -> @(128,128) -> @(128,8)."""
    x = x_ref[...]                                                        # bf16 [TB, 8]
    h1 = jnp.dot(x, w1_ref[...], preferred_element_type=jnp.float32) + b1_ref[...]
    h1 = jnp.maximum(h1, 0.0)                                             # f32  [TB, 128]
    h2 = jnp.dot(h1.astype(jnp.bfloat16), w2_ref[...],
                 preferred_element_type=jnp.float32) + b2_ref[...]
    h2 = jnp.maximum(h2, 0.0)                                             # f32  [TB, 128]
    q = jnp.dot(h2.astype(jnp.bfloat16), w3_ref[...],
                preferred_element_type=jnp.float32) + b3_ref[...]
    o_ref[...] = q.astype(o_ref.dtype)                                    # f32  [TB, 8]


def init_params(key, state_size, action_size, hidden=64):
    """Unpadded f32 params, mimicking torch.nn.Linear init U[-1/sqrt(in), 1/sqrt(in)].

    Weights stored as [in_features, out_features] (transpose of PyTorch) so the
    kernel computes plain x @ W + b.
    """
    def linear(k, fan_in, fan_out):
        kw, kb = jax.random.split(k)
        bound = 1.0 / jnp.sqrt(jnp.float32(fan_in))
        w = jax.random.uniform(kw, (fan_in, fan_out), jnp.float32, -bound, bound)
        b = jax.random.uniform(kb, (1, fan_out), jnp.float32, -bound, bound)
        return w, b

    k1, k2, k3 = jax.random.split(key, 3)
    w1, b1 = linear(k1, state_size, hidden)
    w2, b2 = linear(k2, hidden, hidden)
    w3, b3 = linear(k3, hidden, action_size)
    return {"w1": w1, "b1": b1, "w2": w2, "b2": b2, "w3": w3, "b3": b3}


def pad_params(params, state_pad=STATE_PAD, hidden_pad=LANE, action_pad=ACTION_PAD):
    """Zero-pad dims once at setup time and cast weights to bf16 (biases stay f32).

    state 4->8, hidden 64->128, action 2->8.  Padded rows/cols are exactly zero,
    so padded lanes stay zero through the whole network (ReLU(0)=0) and never
    leak into the real outputs.
    """
    def pad_to(a, rows, cols):
        r, c = a.shape
        return jnp.pad(a, ((0, rows - r), (0, cols - c)))

    return {
        "w1": pad_to(params["w1"], state_pad, hidden_pad).astype(jnp.bfloat16),
        "b1": pad_to(params["b1"], 1, hidden_pad),                         # f32
        "w2": pad_to(params["w2"], hidden_pad, hidden_pad).astype(jnp.bfloat16),
        "b2": pad_to(params["b2"], 1, hidden_pad),                         # f32
        "w3": pad_to(params["w3"], hidden_pad, action_pad).astype(jnp.bfloat16),
        "b3": pad_to(params["b3"], 1, action_pad),                         # f32
    }


def qnetwork_forward(state, padded_params, action_size, *, max_tb=4096):
    """state: [B, state_size] f32 -> Q-values [B, action_size] f32.

    Batch tile tb = round_up(ceil(B / n_tensorcores), 16), capped at max_tb:
    one grid step on v5e/v6e, two balanced 'parallel' steps on v7x.  Weights
    use constant index_maps so they stay VMEM-resident across the grid.
    """
    w1, b1, w2, b2, w3, b3 = (padded_params[k]
                              for k in ("w1", "b1", "w2", "b2", "w3", "b3"))
    B, S = state.shape
    SP = w1.shape[0]          # padded state  (8)
    HP = w1.shape[1]          # padded hidden (128)
    AP = w3.shape[1]          # padded action (8)
    assert action_size <= AP

    n_cores = _num_tensorcores()
    tb = min(max_tb, max(16, _round_up(pl.cdiv(B, n_cores), 16)))
    n_blocks = pl.cdiv(B, tb)
    b_pad = n_blocks * tb

    # Pad batch to a multiple of tb and the state dim 4 -> 8, then cast bf16.
    x = jnp.pad(state, ((0, b_pad - B), (0, SP - S))).astype(jnp.bfloat16)

    const = lambda i: (0, 0)  # weights/biases: same block every step -> DMA'd once

    out = pl.pallas_call(
        qnetwork_kernel,
        out_shape=jax.ShapeDtypeStruct((b_pad, AP), jnp.float32),
        grid=(n_blocks,),
        in_specs=[
            pl.BlockSpec((tb, SP), lambda i: (i, 0)),   # activations: tiled over batch
            pl.BlockSpec((SP, HP), const),              # w1 (bf16)
            pl.BlockSpec((1, HP), const),               # b1 (f32)
            pl.BlockSpec((HP, HP), const),              # w2 (bf16)
            pl.BlockSpec((1, HP), const),               # b2 (f32)
            pl.BlockSpec((HP, AP), const),              # w3 (bf16)
            pl.BlockSpec((1, AP), const),               # b3 (f32)
        ],
        out_specs=pl.BlockSpec((tb, AP), lambda i: (i, 0)),
        compiler_params=pltpu.CompilerParams(
            dimension_semantics=("parallel",)),         # v7x: batch grid split across 2 TCs
    )(x, w1, b1, w2, b2, w3, b3)

    # Tiny slice: drop batch padding and the 6 padded action columns.
    return out[:B, :action_size]


def qnetwork_reference_f32(state, params):
    h1 = jnp.maximum(state @ params["w1"] + params["b1"], 0.0)
    h2 = jnp.maximum(h1 @ params["w2"] + params["b2"], 0.0)
    return h2 @ params["w3"] + params["b3"]


def qnetwork_reference_bf16(state, params):
    """Same mixed precision as the kernel: bf16 matmul inputs, f32 accumulate/bias/relu."""
    bf = jnp.bfloat16
    x = state.astype(bf)
    h1 = jnp.maximum(jnp.dot(x, params["w1"].astype(bf),
                             preferred_element_type=jnp.float32) + params["b1"], 0.0)
    h2 = jnp.maximum(jnp.dot(h1.astype(bf), params["w2"].astype(bf),
                             preferred_element_type=jnp.float32) + params["b2"], 0.0)
    return jnp.dot(h2.astype(bf), params["w3"].astype(bf),
                   preferred_element_type=jnp.float32) + params["b3"]


if __name__ == "__main__":
    # CartPole-v1: observation dim = 4, actions = 2.
    STATE_SIZE = 4
    ACTION_SIZE = 2
    BATCH = 32

    key = jax.random.PRNGKey(0)
    k_params, k_state = jax.random.split(key)

    params = init_params(k_params, STATE_SIZE, ACTION_SIZE)     # unpadded f32 (reference)
    padded = pad_params(params)                                  # lane-dense bf16/f32 (kernel)
    state = jax.random.normal(k_state, (BATCH, STATE_SIZE), dtype=jnp.float32)

    q_values = jax.block_until_ready(qnetwork_forward(state, padded, ACTION_SIZE))
    assert q_values.shape == (BATCH, ACTION_SIZE)

    # Tight check against a JAX reference using the same mixed precision,
    # loose check against the pure-f32 reference (bf16 inputs change the math).
    ref_bf16 = qnetwork_reference_bf16(state, params)
    ref_f32 = qnetwork_reference_f32(state, params)
    assert jnp.allclose(q_values, ref_bf16, atol=1e-2, rtol=1e-2)
    assert jnp.allclose(q_values, ref_f32, atol=3e-2, rtol=3e-2)

    # Ragged / tiny batch path: tb shrinks to 16 rows instead of padding to 128.
    q_small = jax.block_until_ready(qnetwork_forward(state[:5], padded, ACTION_SIZE))
    assert q_small.shape == (5, ACTION_SIZE)
    assert jnp.allclose(q_small, ref_f32[:5], atol=3e-2, rtol=3e-2)

    print("KERNEL_OK")
</pallas_src>

<mosaic_0001>
module attributes {stable_mosaic.version = 11 : i64} {
  func.func @qnetwork_kernel(%arg0: i32, %arg1: memref<32x8xbf16, #tpu.memory_space<vmem>>, %arg2: memref<8x128xbf16, #tpu.memory_space<vmem>>, %arg3: memref<1x128xf32, #tpu.memory_space<vmem>>, %arg4: memref<128x128xbf16, #tpu.memory_space<vmem>>, %arg5: memref<1x128xf32, #tpu.memory_space<vmem>>, %arg6: memref<128x8xbf16, #tpu.memory_space<vmem>>, %arg7: memref<1x8xf32, #tpu.memory_space<vmem>>, %arg8: memref<32x8xf32, #tpu.memory_space<vmem>>) attributes {dimension_semantics = [#tpu.dimension_semantics<parallel>], iteration_bounds = array<i64: 1>, scalar_prefetch = 0 : i64, scratch_operands = 0 : i64, tpu.core_type = #tpu.core_type<tc>, window_params = [{transform_indices = @transform_0, window_bounds = array<i64: 32, 8>}, {pipeline_mode = #tpu.pipeline_mode<synchronous>, transform_indices = @transform_1, window_bounds = array<i64: 8, 128>}, {pipeline_mode = #tpu.pipeline_mode<synchronous>, transform_indices = @transform_2, window_bounds = array<i64: 1, 128>}, {pipeline_mode = #tpu.pipeline_mode<synchronous>, transform_indices = @transform_3, window_bounds = array<i64: 128, 128>}, {pipeline_mode = #tpu.pipeline_mode<synchronous>, transform_indices = @transform_4, window_bounds = array<i64: 1, 128>}, {pipeline_mode = #tpu.pipeline_mode<synchronous>, transform_indices = @transform_5, window_bounds = array<i64: 128, 8>}, {pipeline_mode = #tpu.pipeline_mode<synchronous>, transform_indices = @transform_6, window_bounds = array<i64: 1, 8>}, {transform_indices = @transform_7, window_bounds = array<i64: 32, 8>}]} {
    %c0 = arith.constant 0 : index
    %c0_0 = arith.constant 0 : index
    %0 = vector.load %arg1[%c0, %c0_0] : memref<32x8xbf16, #tpu.memory_space<vmem>>, vector<32x8xbf16>
    %c0_1 = arith.constant 0 : index
    %c0_2 = arith.constant 0 : index
    %1 = vector.load %arg2[%c0_1, %c0_2] : memref<8x128xbf16, #tpu.memory_space<vmem>>, vector<8x128xbf16>
    %cst = arith.constant dense<0.000000e+00> : vector<32x128xf32>
    %2 = tpu.matmul %0, %1, %cst {dimension_numbers = #tpu.dot_dimension_numbers<[1], [0], [0], [1], [0, 0, 1, 1], [], []>} : vector<32x8xbf16>, vector<8x128xbf16>, vector<32x128xf32> -> vector<32x128xf32>
    %c0_3 = arith.constant 0 : index
    %c0_4 = arith.constant 0 : index
    %3 = vector.load %arg3[%c0_3, %c0_4] : memref<1x128xf32, #tpu.memory_space<vmem>>, vector<1x128xf32>
    %4 = vector.broadcast %3 : vector<1x128xf32> to vector<32x128xf32>
    %5 = arith.addf %2, %4 : vector<32x128xf32>
    %cst_5 = arith.constant 0.000000e+00 : f32
    %6 = vector.broadcast %cst_5 : f32 to vector<32x128xf32>
    %7 = arith.maximumf %5, %6 : vector<32x128xf32>
    %8 = arith.truncf %7 : vector<32x128xf32> to vector<32x128xbf16>
    %c0_6 = arith.constant 0 : index
    %c0_7 = arith.constant 0 : index
    %9 = vector.load %arg4[%c0_6, %c0_7] : memref<128x128xbf16, #tpu.memory_space<vmem>>, vector<128x128xbf16>
    %cst_8 = arith.constant dense<0.000000e+00> : vector<32x128xf32>
    %10 = tpu.matmul %8, %9, %cst_8 {dimension_numbers = #tpu.dot_dimension_numbers<[1], [0], [0], [1], [0, 0, 1, 1], [], []>} : vector<32x128xbf16>, vector<128x128xbf16>, vector<32x128xf32> -> vector<32x128xf32>
    %c0_9 = arith.constant 0 : index
    %c0_10 = arith.constant 0 : index
    %11 = vector.load %arg5[%c0_9, %c0_10] : memref<1x128xf32, #tpu.memory_space<vmem>>, vector<1x128xf32>
    %12 = vector.broadcast %11 : vector<1x128xf32> to vector<32x128xf32>
    %13 = arith.addf %10, %12 : vector<32x128xf32>
    %cst_11 = arith.constant 0.000000e+00 : f32
    %14 = vector.broadcast %cst_11 : f32 to vector<32x128xf32>
    %15 = arith.maximumf %13, %14 : vector<32x128xf32>
    %16 = arith.truncf %15 : vector<32x128xf32> to vector<32x128xbf16>
    %c0_12 = arith.constant 0 : index
    %c0_13 = arith.constant 0 : index
    %17 = vector.load %arg6[%c0_12, %c0_13] : memref<128x8xbf16, #tpu.memory_space<vmem>>, vector<128x8xbf16>
    %cst_14 = arith.constant dense<0.000000e+00> : vector<32x8xf32>
    %18 = tpu.matmul %16, %17, %cst_14 {dimension_numbers = #tpu.dot_dimension_numbers<[1], [0], [0], [1], [0, 0, 1, 1], [], []>} : vector<32x128xbf16>, vector<128x8xbf16>, vector<32x8xf32> -> vector<32x8xf32>
    %c0_15 = arith.constant 0 : index
    %c0_16 = arith.constant 0 : index
    %19 = vector.load %arg7[%c0_15, %c0_16] : memref<1x8xf32, #tpu.memory_space<vmem>>, vector<1x8xf32>
    %20 = vector.broadcast %19 : vector<1x8xf32> to vector<32x8xf32>
    %21 = arith.addf %18, %20 : vector<32x8xf32>
    %c0_17 = arith.constant 0 : index
    %c0_18 = arith.constant 0 : index
    %22 = vector.load %arg8[%c0_17, %c0_18] : memref<32x8xf32, #tpu.memory_space<vmem>>, vector<32x8xf32>
    tpu.vector_store %arg8[%c0_17, %c0_18], %21 {strides = array<i32>} : memref<32x8xf32, #tpu.memory_space<vmem>>, vector<32x8xf32>,
    return
  }
  func.func @transform_0(%arg0: i32) -> (i32, i32) {
    %c0_i32 = arith.constant 0 : i32
    %c0_i32_0 = arith.constant 0 : i32
    return %arg0, %c0_i32 : i32, i32
  }
  func.func @transform_1(%arg0: i32) -> (i32, i32) {
    %c0_i32 = arith.constant 0 : i32
    %c0_i32_0 = arith.constant 0 : i32
    %c0_i32_1 = arith.constant 0 : i32
    return %c0_i32, %c0_i32_0 : i32, i32
  }
  func.func @transform_2(%arg0: i32) -> (i32, i32) {
    %c0_i32 = arith.constant 0 : i32
    %c0_i32_0 = arith.constant 0 : i32
    %c0_i32_1 = arith.constant 0 : i32
    return %c0_i32, %c0_i32_0 : i32, i32
  }
  func.func @transform_3(%arg0: i32) -> (i32, i32) {
    %c0_i32 = arith.constant 0 : i32
    %c0_i32_0 = arith.constant 0 : i32
    %c0_i32_1 = arith.constant 0 : i32
    return %c0_i32, %c0_i32_0 : i32, i32
  }
  func.func @transform_4(%arg0: i32) -> (i32, i32) {
    %c0_i32 = arith.constant 0 : i32
    %c0_i32_0 = arith.constant 0 : i32
    %c0_i32_1 = arith.constant 0 : i32
    return %c0_i32, %c0_i32_0 : i32, i32
  }
  func.func @transform_5(%arg0: i32) -> (i32, i32) {
    %c0_i32 = arith.constant 0 : i32
    %c0_i32_0 = arith.constant 0 : i32
    %c0_i32_1 = arith.constant 0 : i32
    return %c0_i32, %c0_i32_0 : i32, i32
  }
  func.func @transform_6(%arg0: i32) -> (i32, i32) {
    %c0_i32 = arith.constant 0 : i32
    %c0_i32_0 = arith.constant 0 : i32
    %c0_i32_1 = arith.constant 0 : i32
    return %c0_i32, %c0_i32_0 : i32, i32
  }
  func.func @transform_7(%arg0: i32) -> (i32, i32) {
    %c0_i32 = arith.constant 0 : i32
    %c0_i32_0 = arith.constant 0 : i32
    return %arg0, %c0_i32 : i32, i32
  }
}

</mosaic_0001>

<bundles_post_ra>
// kernel: tpu_custom_call.1
= control target key start
LH: loop header
LB: loop body
LE: loop exit
PB: predicated region body
PF: predicated region fallthrough
CT: control target
= control target key end

     0   :  { %vm56_vm0 = vcmask 1043456   ;;  %vm49_vm1 = vcmask 64512   ;;  %s604_s1 = inlined_call_operand.vmem [shape: bf16[8,128], index: 1, kind: input, shape index: {}]   ;;  %s605_s0 = inlined_call_operand.vmem [shape: bf16[32,8], index: 0, kind: input, shape index: {}]   ;;  %s606_s3 = inlined_call_operand.vmem [shape: bf16[128,128], index: 3, kind: input, shape index: {}]   ;;  %s607_s5 = inlined_call_operand.vmem [shape: bf16[128,8], index: 5, kind: input, shape index: {}]   ;;  %s608_s2 = inlined_call_operand.vmem [shape: f32[1,128], index: 2, kind: input, shape index: {}]   ;;  %s609_s4 = inlined_call_operand.vmem [shape: f32[1,128], index: 4, kind: input, shape index: {}]   ;;  %s610_s6 = inlined_call_operand.vmem [shape: f32[1,8], index: 6, kind: input, shape index: {}]   ;;  %s611_s7 = inlined_call_operand.vmem [shape: f32[32,8], index: 7, kind: output, shape index: {}]  }
   0x1   :  { %v31_v0 = vld [vmem:[%s604_s1] sm:$0xf]  ;;  %v463_v3 = vld [vmem:[%s605_s0 + $0x8] sm:$0xff]   ;;  %v464_v4 = vld [vmem:[%s606_s3 + $0x38] sm:$0xff]  }
   0x2   :  { %461 = vmatprep.subr.msk.bf16.mxu0 %vm56_vm0, %v31_v0  ;;  %v58_v1 = vsel %vm56_vm0, %v31_v0, 0  ;;  %v462_v2 = vld [vmem:[%s605_s0] sm:$0xff]   ;;  %v465_v5 = vld [vmem:[%s606_s3 + $0x30] sm:$0xff]   ;;  %421 = vmatprep.subr.bf16.mxu1 %v464_v4  ;;  %v466_v6 = vld [vmem:[%s606_s3 + $0x28] sm:$0xff]  }
   0x3   :  { %416 = vmatpush3.bf16.msra.mxu0 %v58_v1  ;;  %417 = vmatprep.mubr.msk.bf16.mxu0 %vm49_vm1, %v462_v2  ;;  %v467_v7 = vld [vmem:[%s606_s3 + $0x20] sm:$0xff]   ;;  %v468_v8 = vld [vmem:[%s606_s3 + $0x18] sm:$0xff]   ;;  %v469_v9 = vld [vmem:[%s606_s3 + $0x10] sm:$0xff]  }
   0x4   :  { %422 = vmatpush3.bf16.msra.mxu1 %v464_v4  ;;  %v470_v10 = vld [vmem:[%s606_s3 + $0x8] sm:$0xff]   ;;  %v471_v11 = vld [vmem:[%s606_s3] sm:$0xff]   ;;  %v472_v12 = vld [vmem:[%s607_s5 + $0x38] sm:$0xff]  }
   0x5   :  { %423 = vmatprep.subr.bf16.mxu1 %v465_v5  ;;  %v473_v13 = vld [vmem:[%s607_s5 + $0x30] sm:$0xff]   ;;  %441 = vmatprep.subr.bf16.mxu0 %v472_v12  ;;  %v474_v14 = vld [vmem:[%s607_s5 + $0x28] sm:$0xff]   ;;  %v475_v15 = vld [vmem:[%s607_s5 + $0x20] sm:$0xff]  }
   0x6   :  { %418 = vmatmul.mubr.msk.bf16.vlgmr.msra.gmra.mxu0 %vm49_vm1, %v463_v3  ;;  %v476_v16 = vld [vmem:[%s607_s5 + $0x18] sm:$0xff]   ;;  %v369_v19 = vld [vmem:[%s608_s2] ss:$0 sm:$0xff]  ;;  %v477_v32 = vld [vmem:[%s607_s5 + $0x10] sm:$0xff]  }
   0x7   :  { %442 = vmatpush3.bf16.msra.mxu0 %v472_v12  ;;  %v478_v33 = vld [vmem:[%s607_s5 + $0x8] sm:$0xff]   ;;  %v479_v34 = vld [vmem:[%s607_s5] sm:$0xff]  }
   0x8   :  { %424 = vmatpush3.bf16.msra.mxu1 %v465_v5  ;;  %443 = vmatprep.subr.bf16.mxu0 %v473_v13  ;;  %v374_v37 = vld [vmem:[%s609_s4] ss:$0 sm:$0xff] }
   0x9   :  { %425 = vmatprep.subr.bf16.mxu1 %v466_v6  ;;  %v383_v50 = vld [vmem:[%s610_s6] ss:$0 sm:$0xff] }
   0xb   :  { %444 = vmatpush3.bf16.msra.mxu0 %v473_v13 }
   0xc   :  { %426 = vmatpush3.bf16.msra.mxu1 %v466_v6  ;;  %445 = vmatprep.subr.bf16.mxu0 %v474_v14 }
   0xd   :  { %427 = vmatprep.subr.bf16.mxu1 %v467_v7 }
   0xf   :  { %446 = vmatpush3.bf16.msra.mxu0 %v474_v14 }
  0x10   :  { %428 = vmatpush3.bf16.msra.mxu1 %v467_v7  ;;  %447 = vmatprep.subr.bf16.mxu0 %v475_v15 }
  0x11   :  { %429 = vmatprep.subr.bf16.mxu1 %v468_v8 }
  0x13   :  { %448 = vmatpush3.bf16.msra.mxu0 %v475_v15 }
  0x14   :  { %430 = vmatpush3.bf16.msra.mxu1 %v468_v8  ;;  %449 = vmatprep.subr.bf16.mxu0 %v476_v16 }
  0x15   :  { %431 = vmatprep.subr.bf16.mxu1 %v469_v9 }
  0x17   :  { %450 = vmatpush3.bf16.msra.mxu0 %v476_v16 }
  0x18   :  { %432 = vmatpush3.bf16.msra.mxu1 %v469_v9  ;;  %451 = vmatprep.subr.bf16.mxu0 %v477_v32 }
  0x19   :  { %433 = vmatprep.subr.bf16.mxu1 %v470_v10 }
  0x1b   :  { %452 = vmatpush3.bf16.msra.mxu0 %v477_v32 }
  0x1c   :  { %434 = vmatpush3.bf16.msra.mxu1 %v470_v10  ;;  %453 = vmatprep.subr.bf16.mxu0 %v478_v33 }
  0x1d   :  { %435 = vmatprep.subr.bf16.mxu1 %v471_v11 }
  0x1f   :  { %454 = vmatpush3.bf16.msra.mxu0 %v478_v33 }
  0x20   :  { %436 = vmatpush3.bf16.msra.mxu1 %v471_v11  ;;  %455 = vmatprep.subr.bf16.mxu0 %v479_v34 }
  0x23   :  { %456 = vmatpush3.bf16.msra.mxu0 %v479_v34 }
  0xc6   :  { %v419_v17 = vpop.f32.mrf.mxu0 }
  0xc7   :  { %v103_v23 = vadd.f32 %v419_v17, %v369_v19 }
  0xc8   :  { %v94_v18 = vpop.f32.mrf.mxu0 }
  0xc9   :  { %v95_v21 = vadd.f32 %v369_v19, %v94_v18  ;;  %v111_v29 = vmax.f32 %v103_v23, 0.0 }
  0xca   :  { %v420_v20 = vpop.f32.mrf.mxu0 }
  0xcb   :  { %v106_v22 = vadd.f32 %v420_v20, %v369_v19  ;;  %v109_v27 = vmax.f32 %v95_v21, 0.0 }
  0xcc   :  { %v97_v24 = vpop.f32.mrf.mxu0 }
  0xcd   :  { %v98_v25 = vadd.f32 %v369_v19, %v97_v24  ;;  %v112_v26 = vmax.f32 %v106_v22, 0.0 }
  0xcf   :  { %v110_v28 = vmax.f32 %v98_v25, 0.0  ;;  %v114_v31 = vpack.c.bf16 %v112_v26, %v111_v29 }
  0xd1   :  { %v113_v30 = vpack.c.bf16 %v110_v28, %v109_v27 }
  0xd3   :  { %437 = vmatprep.mubr.bf16.mxu1 %v113_v30 }
  0xd4   :  { %438 = vmatmul.mubr.bf16.vlgmr.msra.gmra.mxu1 %v114_v31 }
 0x194   :  { %v439_v35 = vpop.f32.mrf.mxu1 }
 0x195   :  { %v229_v41 = vadd.f32 %v439_v35, %v374_v37 }
 0x196   :  { %v220_v36 = vpop.f32.mrf.mxu1 }
 0x197   :  { %v221_v39 = vadd.f32 %v374_v37, %v220_v36  ;;  %v237_v47 = vmax.f32 %v229_v41, 0.0 }
 0x198   :  { %v440_v38 = vpop.f32.mrf.mxu1 }
 0x199   :  { %v232_v40 = vadd.f32 %v440_v38, %v374_v37  ;;  %v235_v45 = vmax.f32 %v221_v39, 0.0 }
 0x19a   :  { %v223_v42 = vpop.f32.mrf.mxu1 }
 0x19b   :  { %v224_v43 = vadd.f32 %v374_v37, %v223_v42  ;;  %v238_v44 = vmax.f32 %v232_v40, 0.0 }
 0x19d   :  { %v236_v46 = vmax.f32 %v224_v43, 0.0  ;;  %v240_v49 = vpack.c.bf16 %v238_v44, %v237_v47 }
 0x19f   :  { %v239_v48 = vpack.c.bf16 %v236_v46, %v235_v45 }
 0x1a1   :  { %457 = vmatprep.mubr.bf16.mxu0 %v239_v48 }
 0x1a2   :  { %458 = vmatmul.mubr.bf16.vlgmr.msra.gmra.mxu0 %v240_v49 }
 0x262   :  { %v459_v51 = vpop.f32.mrf.mxu0 }
 0x263   :  { %v355_v52 = vadd.f32 %v459_v51, %v383_v50 }
 0x264   :  { %v346_v53 = vpop.f32.mrf.mxu0 }
 0x265   :  { %363 = vst.msk [vmem:[%s611_s7 + $0x10] sm:$0xff] %vm49_vm1, %v355_v52  ;;  %v347_v54 = vadd.f32 %v383_v50, %v346_v53 }
 0x266   :  { %v460_v55 = vpop.f32.mrf.mxu0 }
 0x267   :  { %361 = vst.msk [vmem:[%s611_s7] sm:$0xff] %vm49_vm1, %v347_v54  ;;  %v358_v56 = vadd.f32 %v460_v55, %v383_v50 }
 0x268   :  { %v349_v57 = vpop.f32.mrf.mxu0 }
 0x269   :  { %364 = vst.msk [vmem:[%s611_s7 + $0x18] sm:$0xff] %vm49_vm1, %v358_v56  ;;  %v350_v58 = vadd.f32 %v383_v50, %v349_v57 }
 0x26b   :  { %362 = vst.msk [vmem:[%s611_s7 + $0x8] sm:$0xff] %vm49_vm1, %v350_v58 }

</bundles_post_ra>
